<compile_context>
chip_gen: v7x
topology: tpu7x:2x2x1
jax: 0.10.0
libtpu: 0.0.40
codegen_flags: <defaults>
</compile_context>

<pallas_src>
import functools

import jax
import jax.numpy as jnp
from jax.experimental import pallas as pl
from jax.experimental.pallas import tpu as pltpu

_LANE = 128     # vreg lane width: feature dims padded to this for lane-dense I/O
_SUBLANE = 8    # f32 sublane granularity for row tiles


def _round_up(n, m):
    return ((n + m - 1) // m) * m


def _tpu_topology():
    """Python-level probe: (tensorcores_per_chip, vmem_capacity_bytes)."""
    kind = ""
    try:
        kind = jax.devices()[0].device_kind.lower()
    except Exception:
        pass
    vmem = None
    try:
        vmem = int(pltpu.get_tpu_info().vmem_capacity_bytes)
    except Exception:
        vmem = None
    if vmem is None:
        vmem = (64 << 20) if "v7" in kind else (128 << 20)
    num_tc = 2 if "v7" in kind else 1
    return num_tc, vmem


def _make_mlp_kernel(num_layers, compute_dtype):
    """refs = (x, w0, b0, w1, b1, ..., out).

    x tile arrives already in compute_dtype (bf16). Weights are compute_dtype,
    biases f32, whole-array VMEM residents. MXU matmuls accumulate in f32;
    bias add + ReLU stay f32; the inter-layer activation is cast back to
    compute_dtype only to feed the next MXU matmul.
    """

    def kernel(*refs):
        x_ref = refs[0]
        o_ref = refs[-1]
        wb = refs[1:-1]
        # TODO(synk): for hidden dims >= 512, stage the inter-layer activation
        # through a VMEM scratch and chunk each dot over N in 256-wide pieces
        # to bound vreg spill / store-slot pressure.
        h = x_ref[...]                                   # (rt, in_pad), compute_dtype
        for i in range(num_layers):
            w = wb[2 * i][...]                           # (in_pad_i, out_pad_i)
            b = wb[2 * i + 1][...]                       # (1, out_pad_i), f32
            acc = jnp.dot(h, w, preferred_element_type=jnp.float32) + b
            if i < num_layers - 1:
                acc = jnp.maximum(acc, 0.0)              # F.relu
                h = acc.astype(compute_dtype)            # feed next MXU matmul
            else:
                h = acc                                  # last layer: no ReLU
        o_ref[...] = h.astype(o_ref.dtype)

    return kernel


def make_mlp(weights, biases, *, compute_dtype=jnp.bfloat16, row_tile=512,
             out_dtype=None):
    """Build a jitted `apply(x)` for the fused MLP.

    weights[i]: (in_i, out_i) == PyTorch nn.Linear weight.T; biases[i]: (out_i,).
    Parameters are zero-padded to 128-lane multiples and cast to compute_dtype
    ONCE here (not on every call).
    """
    num_layers = len(weights)
    dims = [int(weights[0].shape[0])] + [int(w.shape[1]) for w in weights]
    dims_pad = [_round_up(d, _LANE) for d in dims]
    in_dim, out_dim = dims[0], dims[-1]
    in_pad, out_pad = dims_pad[0], dims_pad[-1]
    max_dim = max(dims_pad)

    # ---- pre-pad + pre-cast parameters (zero pad => padded lanes stay 0) ----
    wb_args = []
    for li, (w, b) in enumerate(zip(weights, biases)):
        wi, wo = dims_pad[li], dims_pad[li + 1]
        wp = jnp.pad(jnp.asarray(w, jnp.float32),
                     ((0, wi - w.shape[0]), (0, wo - w.shape[1]))).astype(compute_dtype)
        bp = jnp.pad(jnp.asarray(b, jnp.float32).reshape(1, -1),
                     ((0, 0), (0, wo - b.shape[0])))
        wb_args += [wp, bp]

    num_tc, vmem_cap = _tpu_topology()
    vmem_budget = int(0.85 * vmem_cap)          # headroom for compiler scratch
    cbytes = jnp.dtype(compute_dtype).itemsize
    w_bytes = sum(dims_pad[i] * dims_pad[i + 1] * cbytes for i in range(num_layers))
    b_bytes = sum(dims_pad[i + 1] * 4 for i in range(num_layers))
    # TODO(synk): if w_bytes alone exceeds vmem_budget (huge MLPs), pipeline the
    # per-layer weights over K/N with their own BlockSpecs instead of whole
    # VMEM residency.

    def _vmem_needed(rt, out_itemsize):
        io = 2 * rt * in_pad * cbytes + 2 * rt * out_pad * out_itemsize  # dbl-buffered tiles
        act = 3 * rt * max_dim * 4                                       # f32 h + bf16 copy slack
        return w_bytes + b_bytes + io + act + (2 << 20)

    @jax.jit
    def apply(x):
        orig_shape = x.shape
        assert orig_shape[-1] == in_dim, "last dim of x must equal input_dim"
        out_dt = jnp.dtype(out_dtype) if out_dtype is not None else jnp.dtype(x.dtype)
        x2 = x.reshape(-1, in_dim)
        M = x2.shape[0]

        # Lane-pad the feature dim and cast to compute_dtype in ONE pass.
        # Rows are NOT padded: the last grid block is ragged (Pallas masks OOB
        # writes; rows are independent so pad rows never leak).
        x2p = jnp.pad(x2, ((0, 0), (0, in_pad - in_dim))).astype(compute_dtype)

        # ---- row tiling (all static Python ints under jit) ------------------
        rt = _round_up(max(int(row_tile), _SUBLANE), _SUBLANE)
        rt = min(rt, _round_up(M, _SUBLANE))
        # shrink the tile until the whole working set fits the VMEM budget
        while _vmem_needed(rt, out_dt.itemsize) > vmem_budget and rt > _SUBLANE:
            rt = max(_SUBLANE, _round_up(rt // 2, _SUBLANE))
        # multi-TensorCore chips (v7x): keep grid length a multiple of the TC
        # count so neither core idles; single-TC chips never force-split.
        if num_tc > 1 and M >= num_tc * _LANE:
            g = _round_up(max(pl.cdiv(M, rt), num_tc), num_tc)
            rt = max(_SUBLANE, _round_up(pl.cdiv(M, g), _SUBLANE))
        grid = (pl.cdiv(M, rt),)

        vmem_limit = int(min(_vmem_needed(rt, out_dt.itemsize) + (8 << 20), vmem_budget))

        in_specs = [pl.BlockSpec((rt, in_pad), lambda i: (i, 0))]
        for _ in range(num_layers):
            # Whole-array VMEM residents: fetched once, single-buffered.
            in_specs.append(pl.BlockSpec(memory_space=pltpu.MemorySpace.VMEM))
            in_specs.append(pl.BlockSpec(memory_space=pltpu.MemorySpace.VMEM))
        out_specs = pl.BlockSpec((rt, out_pad), lambda i: (i, 0))

        flops = 2 * M * sum(dims_pad[i] * dims_pad[i + 1] for i in range(num_layers))
        bytes_accessed = (M * in_pad * cbytes + w_bytes + b_bytes
                          + M * out_pad * out_dt.itemsize)

        y2 = pl.pallas_call(
            _make_mlp_kernel(num_layers, compute_dtype),
            out_shape=jax.ShapeDtypeStruct((M, out_pad), out_dt),
            grid_spec=pltpu.PrefetchScalarGridSpec(
                num_scalar_prefetch=0,
                grid=grid,
                in_specs=in_specs,
                out_specs=out_specs,
            ),
            compiler_params=pltpu.CompilerParams(
                dimension_semantics=("parallel",),
                vmem_limit_bytes=vmem_limit,
            ),
            cost_estimate=pl.CostEstimate(
                flops=flops, transcendentals=0, bytes_accessed=bytes_accessed),
        )(x2p, *wb_args)

        # Strip lane padding in the wrapper (not in the kernel).
        return y2[:, :out_dim].reshape(orig_shape[:-1] + (out_dim,))

    return apply


def init_mlp_params(key, input_dim, hidden_dim, output_dim, num_layers):
    """Deterministic init matching the nn.Linear shapes of the PyTorch MLP."""
    h = [hidden_dim] * (num_layers - 1)
    dims_in = [input_dim] + h
    dims_out = h + [output_dim]
    weights, biases = [], []
    for n, k in zip(dims_in, dims_out):
        key, kw, kb = jax.random.split(key, 3)
        bound = 1.0 / jnp.sqrt(jnp.float32(n))
        # stored as (in, out) == PyTorch weight.T
        weights.append(jax.random.uniform(kw, (n, k), jnp.float32, -bound, bound))
        biases.append(jax.random.uniform(kb, (k,), jnp.float32, -bound, bound))
    return weights, biases


def mlp_reference(x, weights, biases):
    num_layers = len(weights)
    h = x
    for i, (w, b) in enumerate(zip(weights, biases)):
        h = h @ w + b
        if i < num_layers - 1:
            h = jnp.maximum(h, 0.0)
    return h


if __name__ == "__main__":
    # Small shapes: batch=2, seq=8, input_dim=32, hidden_dim=64, output_dim=16, 3 layers
    key = jax.random.PRNGKey(0)
    key, kx = jax.random.split(key)

    input_dim, hidden_dim, output_dim, num_layers = 32, 64, 16, 3
    x = jax.random.normal(kx, (2, 8, input_dim), jnp.float32)

    weights, biases = init_mlp_params(key, input_dim, hidden_dim, output_dim, num_layers)

    mlp = make_mlp(weights, biases)             # params padded/cast once, jitted apply
    y = jax.block_until_ready(mlp(x))           # bf16 MXU path, f32 accumulation

    y_ref = mlp_reference(x, weights, biases)   # f32 reference
    assert y.shape == (2, 8, output_dim)
    # Accepted numerics: bf16 weights/matmuls (f32 bias + accumulation) vs f32
    # reference -> bf16-level tolerance.
    assert jnp.allclose(y, y_ref, atol=5e-2, rtol=5e-2), "mismatch vs JAX reference"

    print("KERNEL_OK")
</pallas_src>

<mosaic_0001>
module attributes {stable_mosaic.version = 11 : i64} {
  func.func @kernel(%arg0: i32, %arg1: memref<16x128xbf16, #tpu.memory_space<vmem>>, %arg2: memref<128x128xbf16, #tpu.memory_space<vmem>>, %arg3: memref<1x128xf32, #tpu.memory_space<vmem>>, %arg4: memref<128x128xbf16, #tpu.memory_space<vmem>>, %arg5: memref<1x128xf32, #tpu.memory_space<vmem>>, %arg6: memref<128x128xbf16, #tpu.memory_space<vmem>>, %arg7: memref<1x128xf32, #tpu.memory_space<vmem>>, %arg8: memref<16x128xf32, #tpu.memory_space<vmem>>) attributes {dimension_semantics = [#tpu.dimension_semantics<parallel>], iteration_bounds = array<i64: 1>, scalar_prefetch = 0 : i64, scratch_operands = 0 : i64, tpu.core_type = #tpu.core_type<tc>, window_params = [{transform_indices = @transform_0, window_bounds = array<i64: 16, 128>}, {pipeline_mode = #tpu.pipeline_mode<synchronous>, transform_indices = @transform_1, window_bounds = array<i64: 128, 128>}, {pipeline_mode = #tpu.pipeline_mode<synchronous>, transform_indices = @transform_2, window_bounds = array<i64: 1, 128>}, {pipeline_mode = #tpu.pipeline_mode<synchronous>, transform_indices = @transform_3, window_bounds = array<i64: 128, 128>}, {pipeline_mode = #tpu.pipeline_mode<synchronous>, transform_indices = @transform_4, window_bounds = array<i64: 1, 128>}, {pipeline_mode = #tpu.pipeline_mode<synchronous>, transform_indices = @transform_5, window_bounds = array<i64: 128, 128>}, {pipeline_mode = #tpu.pipeline_mode<synchronous>, transform_indices = @transform_6, window_bounds = array<i64: 1, 128>}, {transform_indices = @transform_7, window_bounds = array<i64: 16, 128>}]} {
    %c0 = arith.constant 0 : index
    %c0_0 = arith.constant 0 : index
    %0 = vector.load %arg1[%c0, %c0_0] : memref<16x128xbf16, #tpu.memory_space<vmem>>, vector<16x128xbf16>
    %c0_1 = arith.constant 0 : index
    %c0_2 = arith.constant 0 : index
    %1 = vector.load %arg2[%c0_1, %c0_2] : memref<128x128xbf16, #tpu.memory_space<vmem>>, vector<128x128xbf16>
    %c0_3 = arith.constant 0 : index
    %c0_4 = arith.constant 0 : index
    %2 = vector.load %arg3[%c0_3, %c0_4] : memref<1x128xf32, #tpu.memory_space<vmem>>, vector<1x128xf32>
    %cst = arith.constant dense<0.000000e+00> : vector<16x128xf32>
    %3 = tpu.matmul %0, %1, %cst {dimension_numbers = #tpu.dot_dimension_numbers<[1], [0], [0], [1], [0, 0, 1, 1], [], []>} : vector<16x128xbf16>, vector<128x128xbf16>, vector<16x128xf32> -> vector<16x128xf32>
    %4 = vector.broadcast %2 : vector<1x128xf32> to vector<16x128xf32>
    %5 = arith.addf %3, %4 : vector<16x128xf32>
    %cst_5 = arith.constant 0.000000e+00 : f32
    %6 = vector.broadcast %cst_5 : f32 to vector<16x128xf32>
    %7 = arith.maximumf %5, %6 : vector<16x128xf32>
    %8 = arith.truncf %7 : vector<16x128xf32> to vector<16x128xbf16>
    %c0_6 = arith.constant 0 : index
    %c0_7 = arith.constant 0 : index
    %9 = vector.load %arg4[%c0_6, %c0_7] : memref<128x128xbf16, #tpu.memory_space<vmem>>, vector<128x128xbf16>
    %c0_8 = arith.constant 0 : index
    %c0_9 = arith.constant 0 : index
    %10 = vector.load %arg5[%c0_8, %c0_9] : memref<1x128xf32, #tpu.memory_space<vmem>>, vector<1x128xf32>
    %cst_10 = arith.constant dense<0.000000e+00> : vector<16x128xf32>
    %11 = tpu.matmul %8, %9, %cst_10 {dimension_numbers = #tpu.dot_dimension_numbers<[1], [0], [0], [1], [0, 0, 1, 1], [], []>} : vector<16x128xbf16>, vector<128x128xbf16>, vector<16x128xf32> -> vector<16x128xf32>
    %12 = vector.broadcast %10 : vector<1x128xf32> to vector<16x128xf32>
    %13 = arith.addf %11, %12 : vector<16x128xf32>
    %cst_11 = arith.constant 0.000000e+00 : f32
    %14 = vector.broadcast %cst_11 : f32 to vector<16x128xf32>
    %15 = arith.maximumf %13, %14 : vector<16x128xf32>
    %16 = arith.truncf %15 : vector<16x128xf32> to vector<16x128xbf16>
    %c0_12 = arith.constant 0 : index
    %c0_13 = arith.constant 0 : index
    %17 = vector.load %arg6[%c0_12, %c0_13] : memref<128x128xbf16, #tpu.memory_space<vmem>>, vector<128x128xbf16>
    %c0_14 = arith.constant 0 : index
    %c0_15 = arith.constant 0 : index
    %18 = vector.load %arg7[%c0_14, %c0_15] : memref<1x128xf32, #tpu.memory_space<vmem>>, vector<1x128xf32>
    %cst_16 = arith.constant dense<0.000000e+00> : vector<16x128xf32>
    %19 = tpu.matmul %16, %17, %cst_16 {dimension_numbers = #tpu.dot_dimension_numbers<[1], [0], [0], [1], [0, 0, 1, 1], [], []>} : vector<16x128xbf16>, vector<128x128xbf16>, vector<16x128xf32> -> vector<16x128xf32>
    %20 = vector.broadcast %18 : vector<1x128xf32> to vector<16x128xf32>
    %21 = arith.addf %19, %20 : vector<16x128xf32>
    %c0_17 = arith.constant 0 : index
    %c0_18 = arith.constant 0 : index
    %22 = vector.load %arg8[%c0_17, %c0_18] : memref<16x128xf32, #tpu.memory_space<vmem>>, vector<16x128xf32>
    tpu.vector_store %arg8[%c0_17, %c0_18], %21 {strides = array<i32>} : memref<16x128xf32, #tpu.memory_space<vmem>>, vector<16x128xf32>,
    return
  }
  func.func @transform_0(%arg0: i32) -> (i32, i32) {
    %c0_i32 = arith.constant 0 : i32
    %c0_i32_0 = arith.constant 0 : i32
    return %arg0, %c0_i32 : i32, i32
  }
  func.func @transform_1(%arg0: i32) -> (i32, i32) {
    %c0_i32 = arith.constant 0 : i32
    %c0_i32_0 = arith.constant 0 : i32
    %c0_i32_1 = arith.constant 0 : i32
    return %c0_i32, %c0_i32_0 : i32, i32
  }
  func.func @transform_2(%arg0: i32) -> (i32, i32) {
    %c0_i32 = arith.constant 0 : i32
    %c0_i32_0 = arith.constant 0 : i32
    %c0_i32_1 = arith.constant 0 : i32
    return %c0_i32, %c0_i32_0 : i32, i32
  }
  func.func @transform_3(%arg0: i32) -> (i32, i32) {
    %c0_i32 = arith.constant 0 : i32
    %c0_i32_0 = arith.constant 0 : i32
    %c0_i32_1 = arith.constant 0 : i32
    return %c0_i32, %c0_i32_0 : i32, i32
  }
  func.func @transform_4(%arg0: i32) -> (i32, i32) {
    %c0_i32 = arith.constant 0 : i32
    %c0_i32_0 = arith.constant 0 : i32
    %c0_i32_1 = arith.constant 0 : i32
    return %c0_i32, %c0_i32_0 : i32, i32
  }
  func.func @transform_5(%arg0: i32) -> (i32, i32) {
    %c0_i32 = arith.constant 0 : i32
    %c0_i32_0 = arith.constant 0 : i32
    %c0_i32_1 = arith.constant 0 : i32
    return %c0_i32, %c0_i32_0 : i32, i32
  }
  func.func @transform_6(%arg0: i32) -> (i32, i32) {
    %c0_i32 = arith.constant 0 : i32
    %c0_i32_0 = arith.constant 0 : i32
    %c0_i32_1 = arith.constant 0 : i32
    return %c0_i32, %c0_i32_0 : i32, i32
  }
  func.func @transform_7(%arg0: i32) -> (i32, i32) {
    %c0_i32 = arith.constant 0 : i32
    %c0_i32_0 = arith.constant 0 : i32
    return %arg0, %c0_i32 : i32, i32
  }
}

</mosaic_0001>

<bundles_post_ra>
// kernel: apply.1
= control target key start
LH: loop header
LB: loop body
LE: loop exit
PB: predicated region body
PF: predicated region fallthrough
CT: control target
= control target key end

     0   :  { %12 = vsyncpa [#allocation3], 0  ;;  %s749_s0 = inlined_call_operand.vmem [shape: bf16[16,128], index: 0, kind: input, shape index: {}]   ;;  %s750_s1 = inlined_call_operand.hbm [shape: bf16[128,128], index: 1, kind: input, shape index: {}]   ;;  %s751_s2 = inlined_call_operand.vmem [shape: f32[1,128], index: 2, kind: input, shape index: {}]   ;;  %s752_s3 = inlined_call_operand.hbm [shape: bf16[128,128], index: 3, kind: input, shape index: {}]   ;;  %s753_s4 = inlined_call_operand.vmem [shape: f32[1,128], index: 4, kind: input, shape index: {}]   ;;  %s754_s5 = inlined_call_operand.vmem [shape: bf16[128,128], index: 5, kind: input, shape index: {}]   ;;  %s755_s6 = inlined_call_operand.vmem [shape: f32[1,128], index: 6, kind: input, shape index: {}]   ;;  %s756_s7 = inlined_call_operand.vmem [shape: f32[16,128], index: 7, kind: output, shape index: {}]  }
   0x1   :  { %13 = vsyncpa [#allocation5], 0  ;;  %s607_s24 = smov [#allocation2]   ;;  %s559_s28 = scalar_lea.hbm %s750_s1, 1024 }
   0x2   :  { %s21_s25 = sshll.u32 %s607_s24, 4  ;;  %p560_p0 = scmp.ne.s32.totalorder %s750_s1, %s559_s28  ;;  %s22_s25 = int_to_ptr.vmem [resolvable:$true] %s21_s25 }
   0x3   :  { %p563_p1 = scmp.lt.u32.totalorder %s559_s28, %s750_s1 }
   0x5   :  { %p565_p2 = pnand %p563_p1, %p560_p0 }
   0x7   :  { %568 = shalt.err (!%p565_p2)
}
   0x8   :  { %s569_s10 = scalar_lea.vmem %s22_s25, 1024  ;;  %p574_p4 = scmp.lt.s32.totalorder %s22_s25, %s22_s25 }
   0x9   :  { %p570_p3 = scmp.ne.s32.totalorder %s22_s25, %s569_s10  ;;  %p575_p5 = scmp.lt.s32.totalorder %s569_s10, %s569_s10 }
   0xb   :  { %p576_p6 = por %p575_p5, %p574_p4 }
   0xd   :  { %p577_p7 = pnand %p576_p6, %p570_p3 }
   0xf   :  { %580 = shalt.err (!%p577_p7)
}
  0x10   :  { %s608_s11 = smov 64   ;;  %s609_s12 = smov 4  }
  0x11   :  { %27 = dma.hbm_to_vmem [thread:$0]  %s750_s1, 1024, %s22_s25, [#allocation3], %s608_s11, %s608_s11, %s609_s12  }
  0x12   :  { %s610_s15 = smov [#allocation4]   ;;  %s581_s19 = scalar_lea.hbm %s752_s3, 1024 }
  0x13   :  { %s35_s16 = sshll.u32 %s610_s15, 4  ;;  %p582_p8 = scmp.ne.s32.totalorder %s752_s3, %s581_s19  ;;  %s36_s16 = int_to_ptr.vmem [resolvable:$true] %s35_s16 }
  0x14   :  { %p585_p9 = scmp.lt.u32.totalorder %s581_s19, %s752_s3 }
  0x16   :  { %p587_p10 = pnand %p585_p9, %p582_p8 }
  0x18   :  { %590 = shalt.err (!%p587_p10)
}
  0x19   :  { %s591_s24 = scalar_lea.vmem %s36_s16, 1024  ;;  %p596_p12 = scmp.lt.s32.totalorder %s36_s16, %s36_s16 }
  0x1a   :  { %p592_p11 = scmp.ne.s32.totalorder %s36_s16, %s591_s24  ;;  %p597_p13 = scmp.lt.s32.totalorder %s591_s24, %s591_s24 }
  0x1c   :  { %p598_p0 = por %p597_p13, %p596_p12 }
  0x1e   :  { %p599_p1 = pnand %p598_p0, %p592_p11 }
  0x20   :  { %602 = shalt.err (!%p599_p1)
}
  0x21   :  { %41 = dma.hbm_to_vmem [thread:$0]  %s752_s3, 1024, %s36_s16, [#allocation5], %s608_s11, %s608_s11, %s609_s12  }
  0x22   :  { %603 = dma.done.wait [#allocation3], 1024  }
  0x23   :  { %604 = vsyncadd [#allocation3], 4294966272 }
  0x24   :  { %605 = dma.done.wait [#allocation5], 1024  }
  0x25   :  { %606 = vsyncadd [#allocation5], 4294966272  ;;  %v611_v0 = vmov 0.0   ;;  %vm612_vm0 = vmmov 0   ;;  %v534_v1 = vld [vmem:[#allocation2] sm:$0xff]   ;;  %v535_v2 = vld [vmem:[#allocation2 + $0x8] sm:$0xff]  }
  0x26   :  { %468 = vmatprep.subr.bf16.mxu0 %v611_v0  ;;  %484 = vmatprep.mubr.msk.bf16.mxu0 %vm612_vm0, %v611_v0  ;;  %v536_v3 = vld [vmem:[#allocation2 + $0x10] sm:$0xff]   ;;  %v543_v4 = vld [vmem:[#allocation4] sm:$0xff]   ;;  %v537_v5 = vld [vmem:[#allocation2 + $0x18] sm:$0xff]  }
  0x27   :  { %488 = vmatprep.subr.bf16.mxu1 %v611_v0  ;;  %504 = vmatprep.mubr.msk.bf16.mxu1 %vm612_vm0, %v611_v0  ;;  %v544_v6 = vld [vmem:[#allocation4 + $0x8] sm:$0xff]   ;;  %v538_v7 = vld [vmem:[#allocation2 + $0x20] sm:$0xff]   ;;  %v545_v8 = vld [vmem:[#allocation4 + $0x10] sm:$0xff]  }
  0x28   :  { %469 = vmatpush3.bf16.msra.mxu0 %v534_v1  ;;  %489 = vmatpush3.bf16.msra.mxu1 %v543_v4  ;;  %v539_v9 = vld [vmem:[#allocation2 + $0x28] sm:$0xff]   ;;  %v546_v10 = vld [vmem:[#allocation4 + $0x18] sm:$0xff]   ;;  %v540_v11 = vld [vmem:[#allocation2 + $0x30] sm:$0xff]  }
  0x29   :  { %470 = vmatprep.subr.bf16.mxu0 %v611_v0  ;;  %490 = vmatprep.subr.bf16.mxu1 %v611_v0  ;;  %v547_v12 = vld [vmem:[#allocation4 + $0x20] sm:$0xff]   ;;  %v541_v13 = vld [vmem:[#allocation2 + $0x38] sm:$0xff]   ;;  %v548_v14 = vld [vmem:[#allocation4 + $0x28] sm:$0xff]  }
  0x2a   :  { %v542_v15 = vld [vmem:[%s749_s0] sm:$0xff]   ;;  %v549_v16 = vld [vmem:[#allocation4 + $0x30] sm:$0xff]   ;;  %v550_v17 = vld [vmem:[#allocation4 + $0x38] sm:$0xff]  }
  0x2b   :  { %v551_v18 = vld [vmem:[%s754_s5] sm:$0xff]   ;;  %v552_v19 = vld [vmem:[%s754_s5 + $0x8] sm:$0xff]   ;;  %v553_v20 = vld [vmem:[%s754_s5 + $0x10] sm:$0xff]  }
  0x2c   :  { %471 = vmatpush3.bf16.msra.mxu0 %v535_v2  ;;  %491 = vmatpush3.bf16.msra.mxu1 %v544_v6  ;;  %v554_v21 = vld [vmem:[%s754_s5 + $0x18] sm:$0xff]   ;;  %v555_v22 = vld [vmem:[%s754_s5 + $0x20] sm:$0xff]   ;;  %v556_v23 = vld [vmem:[%s754_s5 + $0x28] sm:$0xff]  }
  0x2d   :  { %472 = vmatprep.subr.bf16.mxu0 %v611_v0  ;;  %492 = vmatprep.subr.bf16.mxu1 %v611_v0  ;;  %v413_v24 = vld [vmem:[%s751_s2] ss:$0 sm:$0xff]  ;;  %v557_v34 = vld [vmem:[%s754_s5 + $0x30] sm:$0xff]   ;;  %v558_v35 = vld [vmem:[%s754_s5 + $0x38] sm:$0xff]  }
  0x2e   :  { %v423_v36 = vld [vmem:[%s753_s4] ss:$0 sm:$0xff] }
  0x2f   :  { %v432_v46 = vld [vmem:[%s755_s6] ss:$0 sm:$0xff] }
  0x30   :  { %473 = vmatpush3.bf16.msra.mxu0 %v536_v3  ;;  %493 = vmatpush3.bf16.msra.mxu1 %v545_v8 }
  0x31   :  { %474 = vmatprep.subr.bf16.mxu0 %v611_v0  ;;  %494 = vmatprep.subr.bf16.mxu1 %v611_v0 }
  0x34   :  { %475 = vmatpush3.bf16.msra.mxu0 %v537_v5  ;;  %495 = vmatpush3.bf16.msra.mxu1 %v546_v10 }
  0x35   :  { %476 = vmatprep.subr.bf16.mxu0 %v611_v0  ;;  %496 = vmatprep.subr.bf16.mxu1 %v611_v0 }
  0x38   :  { %477 = vmatpush3.bf16.msra.mxu0 %v538_v7  ;;  %497 = vmatpush3.bf16.msra.mxu1 %v547_v12 }
  0x39   :  { %478 = vmatprep.subr.bf16.mxu0 %v611_v0  ;;  %498 = vmatprep.subr.bf16.mxu1 %v611_v0 }
  0x3c   :  { %479 = vmatpush3.bf16.msra.mxu0 %v539_v9  ;;  %499 = vmatpush3.bf16.msra.mxu1 %v548_v14 }
  0x3d   :  { %480 = vmatprep.subr.bf16.mxu0 %v611_v0  ;;  %500 = vmatprep.subr.bf16.mxu1 %v611_v0 }
  0x40   :  { %481 = vmatpush3.bf16.msra.mxu0 %v540_v11  ;;  %501 = vmatpush3.bf16.msra.mxu1 %v549_v16 }
  0x41   :  { %482 = vmatprep.subr.bf16.mxu0 %v611_v0  ;;  %502 = vmatprep.subr.bf16.mxu1 %v611_v0 }
  0x44   :  { %483 = vmatpush3.bf16.msra.mxu0 %v541_v13  ;;  %503 = vmatpush3.bf16.msra.mxu1 %v550_v17 }
  0x45   :  { %508 = vmatprep.subr.bf16.mxu0 %v611_v0 }
  0x47   :  { %485 = vmatmul.mubr.bf16.vlgmr.msra.gmra.mrb[0].mxu0 %v542_v15 }
  0x48   :  { %524 = vmatprep.mubr.msk.bf16.mxu0 %vm612_vm0, %v611_v0  ;;  %509 = vmatpush3.bf16.msra.mxu0 %v551_v18 }
  0x49   :  { %510 = vmatprep.subr.bf16.mxu0 %v611_v0 }
  0x4c   :  { %511 = vmatpush3.bf16.msra.mxu0 %v552_v19 }
  0x4d   :  { %512 = vmatprep.subr.bf16.mxu0 %v611_v0 }
  0x50   :  { %513 = vmatpush3.bf16.msra.mxu0 %v553_v20 }
  0x51   :  { %514 = vmatprep.subr.bf16.mxu0 %v611_v0 }
  0x54   :  { %515 = vmatpush3.bf16.msra.mxu0 %v554_v21 }
  0x55   :  { %516 = vmatprep.subr.bf16.mxu0 %v611_v0 }
  0x58   :  { %517 = vmatpush3.bf16.msra.mxu0 %v555_v22 }
  0x59   :  { %518 = vmatprep.subr.bf16.mxu0 %v611_v0 }
  0x5c   :  { %519 = vmatpush3.bf16.msra.mxu0 %v556_v23 }
  0x5d   :  { %520 = vmatprep.subr.bf16.mxu0 %v611_v0 }
  0x60   :  { %521 = vmatpush3.bf16.msra.mxu0 %v557_v34 }
  0x61   :  { %522 = vmatprep.subr.bf16.mxu0 %v611_v0 }
  0x64   :  { %523 = vmatpush3.bf16.msra.mxu0 %v558_v35 }
 0x11a   :  { %v168_v25 = vpop.f32.mrb[0].mxu0 }
 0x11b   :  { %v169_v26 = vadd.f32 %v413_v24, %v168_v25  ;;  %v486_v27 = vpop.f32.mrb[1].mxu0 }
 0x11c   :  { %v171_v28 = vpop.f32.mrb[2].mxu0 }
 0x11d   :  { %v172_v29 = vadd.f32 %v413_v24, %v171_v28  ;;  %v487_v30 = vpop.f32.mrb[3].mxu0  ;;  %v175_v31 = vmax.f32 %v169_v26, 0.0 }
 0x11f   :  { %v176_v32 = vmax.f32 %v172_v29, 0.0 }
 0x121   :  { %v177_v33 = vpack.c.bf16 %v176_v32, %v175_v31 }
 0x123   :  { %505 = vmatmul.mubr.bf16.vlgmr.msra.gmra.mrb[0].mxu1 %v177_v33 }
 0x1f6   :  { %v283_v37 = vpop.f32.mrb[0].mxu1 }
 0x1f7   :  { %v284_v38 = vadd.f32 %v423_v36, %v283_v37  ;;  %v506_v39 = vpop.f32.mrb[1].mxu1 }
 0x1f8   :  { %v286_v40 = vpop.f32.mrb[2].mxu1 }
 0x1f9   :  { %v287_v41 = vadd.f32 %v423_v36, %v286_v40  ;;  %v507_v42 = vpop.f32.mrb[3].mxu1  ;;  %v290_v43 = vmax.f32 %v284_v38, 0.0 }
 0x1fb   :  { %v291_v44 = vmax.f32 %v287_v41, 0.0 }
 0x1fd   :  { %v292_v45 = vpack.c.bf16 %v291_v44, %v290_v43 }
 0x1ff   :  { %525 = vmatmul.mubr.bf16.vlgmr.msra.gmra.mrb[4].mxu0 %v292_v45 }
 0x2d2   :  { %v398_v47 = vpop.f32.mrb[4].mxu0 }
 0x2d3   :  { %v399_v48 = vadd.f32 %v432_v46, %v398_v47  ;;  %v526_v49 = vpop.f32.mrb[5].mxu0 }
 0x2d4   :  { %v401_v50 = vpop.f32.mrb[6].mxu0 }
 0x2d5   :  { %405 = vst [vmem:[%s756_s7] sm:$0xff] %v399_v48  ;;  %v402_v51 = vadd.f32 %v432_v46, %v401_v50  ;;  %v527_v52 = vpop.f32.mrb[7].mxu0 }
 0x2d7   :  { %406 = vst [vmem:[%s756_s7 + $0x8] sm:$0xff] %v402_v51 }
 0x2d8   :  { %411 = vsyncpa [#allocation3], 1 }
 0x2d9   :  { %412 = vsyncpa [#allocation5], 1 }

</bundles_post_ra>
